<compile_context>
chip_gen: v6e
topology: v6e:2x2x1
jax: 0.10.0
libtpu: 0.0.40
codegen_flags: <defaults>
</compile_context>

<pallas_src>
import math

import jax
import jax.numpy as jnp
from jax.experimental import pallas as pl
from jax.experimental.pallas import tpu as pltpu


# ----------------------------------------------------------------------------
# Kernel: one HBM->HBM DMA per input into its column slice of the output.
# refs = (*in_hbm_refs, out_hbm_ref, dma_sems).  Python loop unrolls at trace
# time (number of inputs and all widths/offsets are static).
# ----------------------------------------------------------------------------
def _concat_dma_kernel(*refs):
    *in_refs, out_ref, sems = refs
    copies = []
    off = 0
    for i, r in enumerate(in_refs):
        n = r.shape[1]                       # static width of input i
        cp = pltpu.make_async_copy(r, out_ref.at[:, pl.ds(off, n)], sems.at[i])
        cp.start()                           # all input copies overlap
        copies.append(cp)
        off += n
    for cp in copies:
        cp.wait()


def _concat2d(xs):
    """Concat 2-D arrays [M, Ni] along axis 1 -> [M, sum(Ni)] in one pallas_call."""
    M = int(xs[0].shape[0])
    Ns = [int(x.shape[1]) for x in xs]
    Ntot = sum(Ns)
    dtype = xs[0].dtype
    itemsize = jnp.dtype(dtype).itemsize
    total_bytes = int(M) * int(Ntot) * int(itemsize)

    return pl.pallas_call(
        _concat_dma_kernel,
        out_shape=jax.ShapeDtypeStruct((M, Ntot), dtype),
        in_specs=[pl.BlockSpec(memory_space=pl.ANY) for _ in xs],
        out_specs=pl.BlockSpec(memory_space=pl.ANY),
        scratch_shapes=[pltpu.SemaphoreType.DMA((len(xs),))],
        cost_estimate=pl.CostEstimate(
            flops=0, transcendentals=0, bytes_accessed=2 * total_bytes),
    )(*xs)


# ----------------------------------------------------------------------------
# torch.cat(x, dim) equivalent (wrapper = validation + metadata-only reshapes
# + one DMA kernel).
# ----------------------------------------------------------------------------
def pallas_concat(xs, dim=1, *, min_kernel_bytes=0):
    """torch.cat(xs, dim).

    min_kernel_bytes: if the flattened output is smaller than this, fall back
    to XLA's native concatenate (launch overhead dominates tiny copies).
    Default 0 -> always use the Pallas kernel.
    """
    xs = list(xs)
    if not xs:
        raise ValueError("pallas_concat needs at least one input tensor")
    ndim = xs[0].ndim
    d = dim % ndim

    # torch.cat semantics: all non-concat dims must match.
    for x in xs:
        if x.ndim != ndim:
            raise ValueError("all inputs must have the same rank")
        for ax in range(ndim):
            if ax != d and x.shape[ax] != xs[0].shape[ax]:
                raise ValueError(
                    f"shape mismatch on non-concat axis {ax}: "
                    f"{x.shape} vs {xs[0].shape}")

    # dtype handling: explicit PyTorch-style promotion (AMP mixed inputs).
    out_dtype = jnp.result_type(*xs)
    xs = [x if x.dtype == out_dtype else x.astype(out_dtype) for x in xs]

    if len(xs) == 1:
        return xs[0]

    lead = xs[0].shape[:d]
    trail = xs[0].shape[d + 1:]
    M = math.prod(lead) if lead else 1
    out_d = sum(int(x.shape[d]) for x in xs)

    out_bytes = (M * sum(math.prod(x.shape[d:]) for x in xs)
                 * jnp.dtype(out_dtype).itemsize)
    if out_bytes < min_kernel_bytes:
        return jnp.concatenate(xs, axis=d)

    # Row-major flattening: concat along d == concat along axis 1 of the 2-D
    # views [prod(lead), prod(shape[d:])].  Reshapes are metadata-only.
    xs2d = [x.reshape(M, -1) for x in xs]
    out2d = _concat2d(xs2d)
    return out2d.reshape(*lead, out_d, *trail)


if __name__ == "__main__":
    key = jax.random.PRNGKey(0)
    k1, k2, k3 = jax.random.split(key, 3)

    # YOLOv5-style usage: feature maps [B, C, H, W] concatenated along channels.
    B, H, W = 2, 16, 16
    x1 = jax.random.normal(k1, (B, 4, H, W), jnp.float32)
    x2 = jax.random.normal(k2, (B, 8, H, W), jnp.float32)
    x3 = jax.random.normal(k3, (B, 4, H, W), jnp.float32)

    out = pallas_concat([x1, x2, x3], dim=1)          # Concat(dimension=1)
    jax.block_until_ready(out)
    ref = jnp.concatenate([x1, x2, x3], axis=1)
    assert out.shape == ref.shape == (B, 16, H, W)
    assert jnp.array_equal(out, ref)

    # Non-default concat dimension through the same kernel.
    out_last = pallas_concat([x1, x3], dim=-1)
    jax.block_until_ready(out_last)
    ref_last = jnp.concatenate([x1, x3], axis=-1)
    assert out_last.shape == ref_last.shape == (B, 4, H, 2 * W)
    assert jnp.array_equal(out_last, ref_last)

    # Mixed-precision inputs (AMP-style): promoted explicitly in the wrapper.
    x2_bf16 = x2.astype(jnp.bfloat16)
    out_mixed = pallas_concat([x1, x2_bf16], dim=1)
    jax.block_until_ready(out_mixed)
    ref_mixed = jnp.concatenate([x1, x2_bf16.astype(jnp.float32)], axis=1)
    assert out_mixed.dtype == jnp.float32
    assert jnp.array_equal(out_mixed, ref_mixed)

    print("KERNEL_OK")
</pallas_src>

<mosaic_0001>
module attributes {stable_mosaic.version = 11 : i64} {
  func.func @_concat_dma_kernel(%arg0: memref<2x1024xf32, #tpu.memory_space<any>>, %arg1: memref<2x2048xf32, #tpu.memory_space<any>>, %arg2: memref<2x1024xf32, #tpu.memory_space<any>>, %arg3: memref<2x4096xf32, #tpu.memory_space<any>>, %arg4: memref<3x!tpu.dma_semaphore, #tpu.memory_space<semaphore_mem>>) attributes {dimension_semantics = [], scalar_prefetch = 0 : i64, scratch_operands = 1 : i64, tpu.core_type = #tpu.core_type<tc>} {
    %c0_i32 = arith.constant 0 : i32
    %c0_i32_0 = arith.constant 0 : i32
    %c0_i32_1 = arith.constant 0 : i32
    %0 = tpu.memref_slice %arg3[%c0_i32_0, %c0_i32_1] : memref<2x4096xf32, #tpu.memory_space<any>> -> memref<2x1024xf32, #tpu.memory_space<any>>
    %1 = tpu.memref_slice %arg4[%c0_i32] : memref<3x!tpu.dma_semaphore, #tpu.memory_space<semaphore_mem>> -> memref<1x!tpu.dma_semaphore, #tpu.memory_space<semaphore_mem>>
    %2 = tpu.memref_squeeze %1 : memref<1x!tpu.dma_semaphore, #tpu.memory_space<semaphore_mem>> -> memref<!tpu.dma_semaphore, #tpu.memory_space<semaphore_mem>>
    tpu.enqueue_dma source(%arg0 : memref<2x1024xf32, #tpu.memory_space<any>>) target(%0 : memref<2x1024xf32, #tpu.memory_space<any>>) target_semaphore(%2 : memref<!tpu.dma_semaphore, #tpu.memory_space<semaphore_mem>>)
    %c1_i32 = arith.constant 1 : i32
    %c0_i32_2 = arith.constant 0 : i32
    %c1024_i32 = arith.constant 1024 : i32
    %3 = tpu.memref_slice %arg3[%c0_i32_2, %c1024_i32] : memref<2x4096xf32, #tpu.memory_space<any>> -> memref<2x2048xf32, #tpu.memory_space<any>>
    %4 = tpu.memref_slice %arg4[%c1_i32] : memref<3x!tpu.dma_semaphore, #tpu.memory_space<semaphore_mem>> -> memref<1x!tpu.dma_semaphore, #tpu.memory_space<semaphore_mem>>
    %5 = tpu.memref_squeeze %4 : memref<1x!tpu.dma_semaphore, #tpu.memory_space<semaphore_mem>> -> memref<!tpu.dma_semaphore, #tpu.memory_space<semaphore_mem>>
    tpu.enqueue_dma source(%arg1 : memref<2x2048xf32, #tpu.memory_space<any>>) target(%3 : memref<2x2048xf32, #tpu.memory_space<any>>) target_semaphore(%5 : memref<!tpu.dma_semaphore, #tpu.memory_space<semaphore_mem>>)
    %c2_i32 = arith.constant 2 : i32
    %c0_i32_3 = arith.constant 0 : i32
    %c3072_i32 = arith.constant 3072 : i32
    %6 = tpu.memref_slice %arg3[%c0_i32_3, %c3072_i32] : memref<2x4096xf32, #tpu.memory_space<any>> -> memref<2x1024xf32, #tpu.memory_space<any>>
    %7 = tpu.memref_slice %arg4[%c2_i32] : memref<3x!tpu.dma_semaphore, #tpu.memory_space<semaphore_mem>> -> memref<1x!tpu.dma_semaphore, #tpu.memory_space<semaphore_mem>>
    %8 = tpu.memref_squeeze %7 : memref<1x!tpu.dma_semaphore, #tpu.memory_space<semaphore_mem>> -> memref<!tpu.dma_semaphore, #tpu.memory_space<semaphore_mem>>
    tpu.enqueue_dma source(%arg2 : memref<2x1024xf32, #tpu.memory_space<any>>) target(%6 : memref<2x1024xf32, #tpu.memory_space<any>>) target_semaphore(%8 : memref<!tpu.dma_semaphore, #tpu.memory_space<semaphore_mem>>)
    %c0_i32_4 = arith.constant 0 : i32
    %c0_i32_5 = arith.constant 0 : i32
    %c0_i32_6 = arith.constant 0 : i32
    %9 = tpu.memref_slice %arg3[%c0_i32_5, %c0_i32_6] : memref<2x4096xf32, #tpu.memory_space<any>> -> memref<2x1024xf32, #tpu.memory_space<any>>
    %10 = tpu.memref_slice %arg4[%c0_i32_4] : memref<3x!tpu.dma_semaphore, #tpu.memory_space<semaphore_mem>> -> memref<1x!tpu.dma_semaphore, #tpu.memory_space<semaphore_mem>>
    %11 = tpu.memref_squeeze %10 : memref<1x!tpu.dma_semaphore, #tpu.memory_space<semaphore_mem>> -> memref<!tpu.dma_semaphore, #tpu.memory_space<semaphore_mem>>
    tpu.wait_dma2 semaphore(%11 : memref<!tpu.dma_semaphore, #tpu.memory_space<semaphore_mem>>) src(%arg0 : memref<2x1024xf32, #tpu.memory_space<any>>) dst(%9 : memref<2x1024xf32, #tpu.memory_space<any>>)
    %c1_i32_7 = arith.constant 1 : i32
    %c0_i32_8 = arith.constant 0 : i32
    %c1024_i32_9 = arith.constant 1024 : i32
    %12 = tpu.memref_slice %arg3[%c0_i32_8, %c1024_i32_9] : memref<2x4096xf32, #tpu.memory_space<any>> -> memref<2x2048xf32, #tpu.memory_space<any>>
    %13 = tpu.memref_slice %arg4[%c1_i32_7] : memref<3x!tpu.dma_semaphore, #tpu.memory_space<semaphore_mem>> -> memref<1x!tpu.dma_semaphore, #tpu.memory_space<semaphore_mem>>
    %14 = tpu.memref_squeeze %13 : memref<1x!tpu.dma_semaphore, #tpu.memory_space<semaphore_mem>> -> memref<!tpu.dma_semaphore, #tpu.memory_space<semaphore_mem>>
    tpu.wait_dma2 semaphore(%14 : memref<!tpu.dma_semaphore, #tpu.memory_space<semaphore_mem>>) src(%arg1 : memref<2x2048xf32, #tpu.memory_space<any>>) dst(%12 : memref<2x2048xf32, #tpu.memory_space<any>>)
    %c2_i32_10 = arith.constant 2 : i32
    %c0_i32_11 = arith.constant 0 : i32
    %c3072_i32_12 = arith.constant 3072 : i32
    %15 = tpu.memref_slice %arg3[%c0_i32_11, %c3072_i32_12] : memref<2x4096xf32, #tpu.memory_space<any>> -> memref<2x1024xf32, #tpu.memory_space<any>>
    %16 = tpu.memref_slice %arg4[%c2_i32_10] : memref<3x!tpu.dma_semaphore, #tpu.memory_space<semaphore_mem>> -> memref<1x!tpu.dma_semaphore, #tpu.memory_space<semaphore_mem>>
    %17 = tpu.memref_squeeze %16 : memref<1x!tpu.dma_semaphore, #tpu.memory_space<semaphore_mem>> -> memref<!tpu.dma_semaphore, #tpu.memory_space<semaphore_mem>>
    tpu.wait_dma2 semaphore(%17 : memref<!tpu.dma_semaphore, #tpu.memory_space<semaphore_mem>>) src(%arg2 : memref<2x1024xf32, #tpu.memory_space<any>>) dst(%15 : memref<2x1024xf32, #tpu.memory_space<any>>)
    return
  }
}

</mosaic_0001>

<bundles_post_ra>
// kernel: tpu_custom_call.1
= control target key start
LH: loop header
LB: loop body
LE: loop exit
PB: predicated region body
PF: predicated region fallthrough
CT: control target
= control target key end

     0   :  { %s76_s15 = smov [#allocation2]   ;;  %s77_s16 = smov 131072   ;;  %s119_s0 = inlined_call_operand.hbm [shape: f32[2,1024], index: 0, kind: input, shape index: {}]   ;;  %s120_s3 = inlined_call_operand.hbm [shape: f32[2,4096], index: 3, kind: output, shape index: {}]   ;;  %s121_s1 = inlined_call_operand.hbm [shape: f32[2,2048], index: 1, kind: input, shape index: {}]   ;;  %s122_s2 = inlined_call_operand.hbm [shape: f32[2,1024], index: 2, kind: input, shape index: {}]  }
   0x1   :  { %s15_s14 = scalar_lea.hbm %s120_s3, 256  ;;  %s78_s17 = smov 0  }
   0x2   :  { %14 = dma.general %s119_s0, 256, %s120_s3, %s76_s15, %s77_s16, [#allocation4], %s78_s17, 0  }
   0x3   :  { %s24_s24 = scalar_lea.hbm %s120_s3, 768  ;;  %s79_s25 = smov [#allocation2 + $0x1]  }
   0x4   :  { %23 = dma.general %s121_s1, 512, %s15_s14, %s79_s25, %s77_s16, [#allocation6], %s78_s17, 0  }
   0x5   :  { %s80_s28 = smov [#allocation2 + $0x2]  }
   0x6   :  { %32 = dma.general %s122_s2, 256, %s24_s24, %s80_s28, %s77_s16, [#allocation8], %s78_s17, 0  }
   0x7   :  { %70 = dma.done.wait [#allocation2], 256 }
   0x8   :  { %71 = vsyncadd [#allocation2], 4294967040 }
   0x9   :  { %72 = dma.done.wait [#allocation2 + $0x1], 512 }
   0xa   :  { %73 = vsyncadd [#allocation2 + $0x1], 4294966784 }
   0xb   :  { %74 = dma.done.wait [#allocation2 + $0x2], 256 }
   0xc   :  { %75 = vsyncadd [#allocation2 + $0x2], 4294967040 }
   0xd   :  { %42 = vsyncmov [#allocation2] }
  0x10   :  { %s43_s0 = vpop.sfrf %42 }
  0x11   :  { %p62_p0 = scmp.ne.s32.totalorder %s43_s0, 0 }
  0x13   :  { %47 = shalt.err (%p62_p0)  }
  0x14   :  { %49 = vsyncmov [#allocation2 + $0x1] }
  0x17   :  { %s50_s3 = vpop.sfrf %49 }
  0x18   :  { %p63_p1 = scmp.ne.s32.totalorder %s50_s3, 0 }
  0x1a   :  { %54 = shalt.err (%p63_p1)  }
  0x1b   :  { %56 = vsyncmov [#allocation2 + $0x2] }
  0x1e   :  { %s57_s1 = vpop.sfrf %56 }
  0x1f   :  { %p64_p2 = scmp.ne.s32.totalorder %s57_s1, 0 }
  0x21   :  { %61 = shalt.err (%p64_p2)  }

</bundles_post_ra>
